<compile_context>
chip_gen: v6e
topology: v6e:2x2x1
jax: 0.10.0
libtpu: 0.0.40
codegen_flags: <defaults>
</compile_context>

<pallas_src>
import math
import jax
import jax.numpy as jnp
from jax.experimental import pallas as pl
from jax.experimental.pallas import tpu as pltpu


def _spatial_attention_kernel(e_ref, w1_ref, b1_ref, w2_ref, b2_ref,
                              x_ref, o_ref):
    # Current batch element's embedding: (1, embed_dim)
    e = e_ref[0]

    # Linear1 + ReLU  -> (1, intermediate_dim)
    h = jnp.dot(e, w1_ref[...], preferred_element_type=jnp.float32) + b1_ref[...]
    h = jnp.maximum(h, 0.0)

    # Linear2 + Sigmoid -> (1, H*W)   (lane-dense: H*W is a multiple of 128)
    a = jnp.dot(h, w2_ref[...], preferred_element_type=jnp.float32) + b2_ref[...]
    a = 1.0 / (1.0 + jnp.exp(-a))

    # Broadcast the (1, H*W) attention map over the channel (sublane) axis and
    # scale this batch element's (C, H*W) feature slab. Lane-dense store.
    o_ref[0] = (a * x_ref[0]).astype(o_ref.dtype)


def spatial_attention(embed_ids, out, params):
    """embed_ids: (N, embed_dim) f32.  out: (N, C, H, W) f32."""
    N, E = embed_ids.shape
    _, C, H, W = out.shape
    HW = H * W
    I = params["w1"].shape[0]           # intermediate_dim (PyTorch weight is (out,in))

    # Pre-transpose weights to (in, out); biases as (1, dim) 2-D rows.
    w1t = params["w1"].T                # (E, I)
    w2t = params["w2"].T                # (I, HW)
    b1 = params["b1"].reshape(1, I)
    b2 = params["b2"].reshape(1, HW)

    # TPU-friendly layouts: embeddings as (N, 1, E) so the per-batch block's
    # last two dims equal the full array dims; feature map flattened to
    # (N, C, H*W) so the output block is lane-dense (last dim = 256).
    embed3 = embed_ids.reshape(N, 1, E)
    out3 = out.reshape(N, C, HW)

    result = pl.pallas_call(
        _spatial_attention_kernel,
        out_shape=jax.ShapeDtypeStruct((N, C, HW), out.dtype),
        grid_spec=pltpu.PrefetchScalarGridSpec(
            num_scalar_prefetch=0,
            grid=(N,),
            in_specs=[
                pl.BlockSpec((1, 1, E), lambda n: (n, 0, 0)),   # embed_ids
                pl.BlockSpec((E, I), lambda n: (0, 0)),         # W1^T (resident)
                pl.BlockSpec((1, I), lambda n: (0, 0)),         # b1
                pl.BlockSpec((I, HW), lambda n: (0, 0)),        # W2^T (resident)
                pl.BlockSpec((1, HW), lambda n: (0, 0)),        # b2
                pl.BlockSpec((1, C, HW), lambda n: (n, 0, 0)),  # feature map
            ],
            out_specs=pl.BlockSpec((1, C, HW), lambda n: (n, 0, 0)),
        ),
        compiler_params=pltpu.CompilerParams(
            dimension_semantics=("parallel",)),
    )(embed3, w1t, b1, w2t, b2, out3)

    return result.reshape(N, C, H, W)


def _reference(embed_ids, out, params):
    """Pure-JAX reference mirroring the PyTorch forward exactly."""
    h = jnp.maximum(embed_ids @ params["w1"].T + params["b1"], 0.0)
    a = jax.nn.sigmoid(h @ params["w2"].T + params["b2"])
    a = a.reshape(out.shape[0], 1, out.shape[2], out.shape[3])
    return a * out


if __name__ == "__main__":
    # Small shapes consistent with the module.
    N = 2                 # batch
    C = 4                 # channels of `out`
    spatial_dim = 16      # H = W = 16  ->  H*W = 256 (lane-dense)
    embed_dim = 32
    intermediate_dim = 32

    key0 = jax.random.PRNGKey(0)
    ks = jax.random.split(key0, 8)

    # Deterministic PyTorch-nn.Linear-style uniform init: U(-1/sqrt(in), 1/sqrt(in)).
    b1_bound = 1.0 / math.sqrt(embed_dim)
    b2_bound = 1.0 / math.sqrt(intermediate_dim)
    params = {
        "w1": jax.random.uniform(ks[0], (intermediate_dim, embed_dim),
                                 jnp.float32, -b1_bound, b1_bound),
        "b1": jax.random.uniform(ks[1], (intermediate_dim,),
                                 jnp.float32, -b1_bound, b1_bound),
        "w2": jax.random.uniform(ks[2], (spatial_dim * spatial_dim, intermediate_dim),
                                 jnp.float32, -b2_bound, b2_bound),
        "b2": jax.random.uniform(ks[3], (spatial_dim * spatial_dim,),
                                 jnp.float32, -b2_bound, b2_bound),
    }

    embed_ids = jax.random.normal(ks[4], (N, embed_dim), jnp.float32)
    feat = jax.random.normal(ks[5], (N, C, spatial_dim, spatial_dim), jnp.float32)

    res = spatial_attention(embed_ids, feat, params)
    res = jax.block_until_ready(res)

    ref = _reference(embed_ids, feat, params)
    assert res.shape == (N, C, spatial_dim, spatial_dim)
    assert jnp.allclose(res, ref, atol=1e-5, rtol=1e-5), "mismatch vs reference"

    print("KERNEL_OK")
</pallas_src>

<mosaic_0001>
module attributes {stable_mosaic.version = 11 : i64} {
  func.func @_spatial_attention_kernel(%arg0: i32, %arg1: memref<1x1x32xf32, #tpu.memory_space<vmem>>, %arg2: memref<32x32xf32, #tpu.memory_space<vmem>>, %arg3: memref<1x32xf32, #tpu.memory_space<vmem>>, %arg4: memref<32x256xf32, #tpu.memory_space<vmem>>, %arg5: memref<1x256xf32, #tpu.memory_space<vmem>>, %arg6: memref<1x4x256xf32, #tpu.memory_space<vmem>>, %arg7: memref<1x4x256xf32, #tpu.memory_space<vmem>>) attributes {dimension_semantics = [#tpu.dimension_semantics<parallel>], iteration_bounds = array<i64: 2>, scalar_prefetch = 0 : i64, scratch_operands = 0 : i64, tpu.core_type = #tpu.core_type<tc>, window_params = [{transform_indices = @transform_0, window_bounds = array<i64: 1, 1, 32>}, {pipeline_mode = #tpu.pipeline_mode<synchronous>, transform_indices = @transform_1, window_bounds = array<i64: 32, 32>}, {pipeline_mode = #tpu.pipeline_mode<synchronous>, transform_indices = @transform_2, window_bounds = array<i64: 1, 32>}, {pipeline_mode = #tpu.pipeline_mode<synchronous>, transform_indices = @transform_3, window_bounds = array<i64: 32, 256>}, {pipeline_mode = #tpu.pipeline_mode<synchronous>, transform_indices = @transform_4, window_bounds = array<i64: 1, 256>}, {transform_indices = @transform_5, window_bounds = array<i64: 1, 4, 256>}, {transform_indices = @transform_6, window_bounds = array<i64: 1, 4, 256>}]} {
    %c0 = arith.constant 0 : index
    %c0_0 = arith.constant 0 : index
    %c0_1 = arith.constant 0 : index
    %0 = vector.load %arg1[%c0, %c0_0, %c0_1] : memref<1x1x32xf32, #tpu.memory_space<vmem>>, vector<1x1x32xf32>
    %1 = vector.shape_cast %0 : vector<1x1x32xf32> to vector<1x32xf32>
    %c0_2 = arith.constant 0 : index
    %c0_3 = arith.constant 0 : index
    %2 = vector.load %arg2[%c0_2, %c0_3] : memref<32x32xf32, #tpu.memory_space<vmem>>, vector<32x32xf32>
    %cst = arith.constant dense<0.000000e+00> : vector<1x32xf32>
    %3 = tpu.matmul %1, %2, %cst {dimension_numbers = #tpu.dot_dimension_numbers<[1], [0], [0], [1], [0, 0, 1, 1], [], []>} : vector<1x32xf32>, vector<32x32xf32>, vector<1x32xf32> -> vector<1x32xf32>
    %c0_4 = arith.constant 0 : index
    %c0_5 = arith.constant 0 : index
    %4 = vector.load %arg3[%c0_4, %c0_5] : memref<1x32xf32, #tpu.memory_space<vmem>>, vector<1x32xf32>
    %5 = arith.addf %3, %4 : vector<1x32xf32>
    %cst_6 = arith.constant 0.000000e+00 : f32
    %6 = vector.broadcast %cst_6 : f32 to vector<1x32xf32>
    %7 = arith.maximumf %5, %6 : vector<1x32xf32>
    %c0_7 = arith.constant 0 : index
    %c0_8 = arith.constant 0 : index
    %8 = vector.load %arg4[%c0_7, %c0_8] : memref<32x256xf32, #tpu.memory_space<vmem>>, vector<32x256xf32>
    %cst_9 = arith.constant dense<0.000000e+00> : vector<1x256xf32>
    %9 = tpu.matmul %7, %8, %cst_9 {dimension_numbers = #tpu.dot_dimension_numbers<[1], [0], [0], [1], [0, 0, 1, 1], [], []>} : vector<1x32xf32>, vector<32x256xf32>, vector<1x256xf32> -> vector<1x256xf32>
    %c0_10 = arith.constant 0 : index
    %c0_11 = arith.constant 0 : index
    %10 = vector.load %arg5[%c0_10, %c0_11] : memref<1x256xf32, #tpu.memory_space<vmem>>, vector<1x256xf32>
    %11 = arith.addf %9, %10 : vector<1x256xf32>
    %cst_12 = arith.constant 0.000000e+00 : f32
    %12 = vector.broadcast %cst_12 : f32 to vector<1x256xf32>
    %13 = arith.subf %12, %11 : vector<1x256xf32>
    %14 = math.exp %13 : vector<1x256xf32>
    %cst_13 = arith.constant 1.000000e+00 : f32
    %15 = vector.broadcast %cst_13 : f32 to vector<1x256xf32>
    %16 = arith.addf %15, %14 : vector<1x256xf32>
    %cst_14 = arith.constant 1.000000e+00 : f32
    %17 = vector.broadcast %cst_14 : f32 to vector<1x256xf32>
    %18 = arith.divf %17, %16 : vector<1x256xf32>
    %c0_15 = arith.constant 0 : index
    %c0_16 = arith.constant 0 : index
    %c0_17 = arith.constant 0 : index
    %19 = vector.load %arg6[%c0_15, %c0_16, %c0_17] : memref<1x4x256xf32, #tpu.memory_space<vmem>>, vector<1x4x256xf32>
    %20 = vector.shape_cast %19 : vector<1x4x256xf32> to vector<4x256xf32>
    %21 = vector.broadcast %18 : vector<1x256xf32> to vector<4x256xf32>
    %22 = arith.mulf %21, %20 : vector<4x256xf32>
    %c0_18 = arith.constant 0 : index
    %c0_19 = arith.constant 0 : index
    %c0_20 = arith.constant 0 : index
    %23 = vector.load %arg7[%c0_18, %c0_19, %c0_20] : memref<1x4x256xf32, #tpu.memory_space<vmem>>, vector<1x4x256xf32>
    %24 = vector.shape_cast %23 : vector<1x4x256xf32> to vector<4x256xf32>
    %25 = vector.shape_cast %22 : vector<4x256xf32> to vector<1x4x256xf32>
    tpu.vector_store %arg7[%c0_18, %c0_19, %c0_20], %25 {strides = array<i32>} : memref<1x4x256xf32, #tpu.memory_space<vmem>>, vector<1x4x256xf32>,
    return
  }
  func.func @transform_0(%arg0: i32) -> (i32, i32, i32) {
    %c0_i32 = arith.constant 0 : i32
    %c0_i32_0 = arith.constant 0 : i32
    %c0_i32_1 = arith.constant 0 : i32
    return %arg0, %c0_i32, %c0_i32_0 : i32, i32, i32
  }
  func.func @transform_1(%arg0: i32) -> (i32, i32) {
    %c0_i32 = arith.constant 0 : i32
    %c0_i32_0 = arith.constant 0 : i32
    %c0_i32_1 = arith.constant 0 : i32
    return %c0_i32, %c0_i32_0 : i32, i32
  }
  func.func @transform_2(%arg0: i32) -> (i32, i32) {
    %c0_i32 = arith.constant 0 : i32
    %c0_i32_0 = arith.constant 0 : i32
    %c0_i32_1 = arith.constant 0 : i32
    return %c0_i32, %c0_i32_0 : i32, i32
  }
  func.func @transform_3(%arg0: i32) -> (i32, i32) {
    %c0_i32 = arith.constant 0 : i32
    %c0_i32_0 = arith.constant 0 : i32
    %c0_i32_1 = arith.constant 0 : i32
    return %c0_i32, %c0_i32_0 : i32, i32
  }
  func.func @transform_4(%arg0: i32) -> (i32, i32) {
    %c0_i32 = arith.constant 0 : i32
    %c0_i32_0 = arith.constant 0 : i32
    %c0_i32_1 = arith.constant 0 : i32
    return %c0_i32, %c0_i32_0 : i32, i32
  }
  func.func @transform_5(%arg0: i32) -> (i32, i32, i32) {
    %c0_i32 = arith.constant 0 : i32
    %c0_i32_0 = arith.constant 0 : i32
    %c0_i32_1 = arith.constant 0 : i32
    return %arg0, %c0_i32, %c0_i32_0 : i32, i32, i32
  }
  func.func @transform_6(%arg0: i32) -> (i32, i32, i32) {
    %c0_i32 = arith.constant 0 : i32
    %c0_i32_0 = arith.constant 0 : i32
    %c0_i32_1 = arith.constant 0 : i32
    return %arg0, %c0_i32, %c0_i32_0 : i32, i32, i32
  }
}

</mosaic_0001>

<bundles_post_ra>
// kernel: tpu_custom_call.1
= control target key start
LH: loop header
LB: loop body
LE: loop exit
PB: predicated region body
PF: predicated region fallthrough
CT: control target
= control target key end

     0   :  { %s1245_s0 = inlined_call_operand.hbm [shape: f32[2,1,32], index: 0, kind: input, shape index: {}]   ;;  %s1246_s1 = inlined_call_operand.hbm [shape: f32[32,32], index: 1, kind: input, shape index: {}]   ;;  %s1247_s2 = inlined_call_operand.vmem [shape: f32[1,32], index: 2, kind: input, shape index: {}]   ;;  %s1248_s3 = inlined_call_operand.hbm [shape: f32[32,256], index: 3, kind: input, shape index: {}]   ;;  %s1249_s4 = inlined_call_operand.vmem [shape: f32[1,256], index: 4, kind: input, shape index: {}]   ;;  %s1250_s5 = inlined_call_operand.hbm [shape: f32[2,4,256], index: 5, kind: input, shape index: {}]   ;;  %s1251_s6 = inlined_call_operand.hbm [shape: f32[2,4,256], index: 6, kind: output, shape index: {}]  }
   0x1   :  { %1256 = sst [smem:[#allocation15_spill]] %s1246_s1 }
   0x2   :  { %11 = vsyncpa [#allocation3], 0 }
   0x3   :  { %13 = vsyncpa [#allocation3 + $0x1], 0 }
   0x4   :  { %14 = vsyncpa [#allocation6], 0 }
   0x5   :  { %15 = vsyncpa [#allocation9], 0 }
   0x6   :  { %17 = vsyncpa [#allocation9 + $0x1], 0 }
   0x7   :  { %18 = vsyncpa [#allocation4], 0 }
   0x8   :  { %20 = vsyncpa [#allocation4 + $0x1], 0  ;;  %s1015_s21 = smov 0   ;;  %s1017_s22 = smov 0  }
   0x9   :  { %s1019_s23 = smov 0   ;;  %s1021_s24 = smov 0  }
   0xa LB: > { %s1036_s25 = sadd.s32 4294967295, %s967_s24   ;;  %s661_s26 = sadd.s32 4294967294, %s967_s24   ;;  %s967_s24 = sphi %s1021_s24, %s1276_s24   ;;  %s963_s23 = sphi %s1019_s23, %s1275_s23   ;;  %s959_s22 = sphi %s1017_s22, %s1274_s22   ;;  %s955_s21 = sphi %s1015_s21, %s1273_s21  }
   0xb   : > { %p46_p0 = scmp.ne.s32.totalorder %s959_s22, %s955_s21  ;;  %p1252_p1 = scmp.eq.s32.totalorder %s1036_s25, 0 }
   0xc   : > { %p186_p3 = scmp.eq.s32.totalorder %s661_s26, 1  ;;  %p662_p5 = scmp.ge.s32.totalorder %s967_s24, 1 }
   0xd   : > { %p1045_p4 = por %p1252_p1, %p46_p0  ;;  %p193_p7 = scmp.lt.s32.totalorder %s967_s24, 3 }
   0xe   : > { %p1050_p6 = por %p186_p3, %p46_p0  ;;  %s969_s30 = smov [#allocation5]  }
   0xf   : > { %s1257_s27 = scalar_select %p1045_p4, 1, 0 }
  0x10   : > { %s1258_s28 = scalar_select %p1050_p6, 1, 0 }
  0x11   : > { %p1055_p8 = pnand %p662_p5, %p193_p7  ;;  %s205_s7 = sshll.u32 %s969_s30, 4  ;;  %s206_s7 = int_to_ptr.vmem [resolvable:$true] %s205_s7 }
  0x12   : > { %s970_s9 = smov [#allocation7]   ;;  %s798_s11 = scalar_lea.vmem %s206_s7, 512 }
  0x13   : > { %s1259_s29 = scalar_select %p1055_p8, 1, 0 }
  0x14   : > { %p714_p9 = pneg %p1055_p8  ;;  %s221_s10 = sshll.u32 %s970_s9, 4  ;;  %s222_s10 = int_to_ptr.vmem [resolvable:$true] %s221_s10 }
  0x15   : > { %p799_p13 = scmp.ne.s32.totalorder %s206_s7, %s798_s11  ;;  %p806_p5 = scmp.lt.s32.totalorder %s206_s7, %s206_s7 }
  0x16   : > { %p1064_p11 = pnand %p714_p9, %p1252_p1  ;;  %p807_p7 = scmp.lt.s32.totalorder %s798_s11, %s798_s11 }
  0x18   : > { %p789_p12 = pneg %p1064_p11  ;;  %p808_p10 = por %p807_p7, %p806_p5 }
  0x1a   : > { %p801_p0 = pnand %p799_p13, %p789_p12 }
  0x1c   : > { %p802_p3 = pneg %p801_p0 }
  0x1e   : > { %p809_p9 = pnand %p808_p10, %p802_p3 }
  0x20   : > { %812 = shalt.err (!%p809_p9)
}
  0x21   : > { %s971_s12 = smov 128   ;;  %s972_s13 = smov 8  }
  0x22   : > { %s1261_s1 = sld [smem:[#allocation15_spill]]  ;;  %s824_s16 = scalar_lea.vmem %s222_s10, 1024 }
  0x23   : > { %p825_p1 = scmp.ne.s32.totalorder %s222_s10, %s824_s16  ;;  %p832_p2 = scmp.lt.s32.totalorder %s222_s10, %s222_s10 }
  0x24   : > { %p833_p6 = scmp.lt.s32.totalorder %s824_s16, %s824_s16 }
  0x25   : > { %p827_p13 = pnand %p825_p1, %p789_p12 }
  0x26   : > { %p834_p5 = por %p833_p6, %p832_p2 }
  0x27   : > { %p828_p0 = pneg %p827_p13 }
  0x28   : > { %717 = dma.hbm_to_vmem [thread:$0]  (!%p1064_p11), %s1261_s1, 512, %s206_s7, [#allocation6], %s971_s12, %s971_s12, %s972_s13  }
  0x29   : > { %p835_p10 = pnand %p834_p5, %p828_p0 }
  0x2b   : > { %838 = shalt.err (!%p835_p10)
}
  0x2c   : > { %s973_s17 = smov 256   ;;  %s974_s18 = smov 16  }
  0x2d   : > { %720 = dma.hbm_to_vmem [thread:$0]  (!%p1064_p11), %s1248_s3, 1024, %s222_s10, [#allocation6], %s973_s17, %s973_s17, %s974_s18  }
  0x2e   : > { %s1087_s26 = sadd.s32 1, %s967_s24   ;;  %s33_s7 = sadd.s32 1, %s963_s23 }
  0x2f   : > { %s30_s30 = ssub.s32 %s967_s24, %s1087_s26  ;;  %p40_p2 = scmp.ne.s32.totalorder %s963_s23, %s959_s22 }
  0x30   : > { %p31_p1 = scmp.eq.s32.totalorder %s30_s30, 0  ;;  %p41_p6 = scmp.eq.s32.totalorder %s967_s24, 0 }
  0x31   : > { %p1262_p3 = scmp.eq.s32.totalorder %s1036_s25, 1  ;;  %p734_p9 = scmp.lt.s32.totalorder %s967_s24, 2 }
  0x32   : > { %s1096_s9 = scalar_select %p31_p1, %s963_s23, %s33_s7  }
  0x33   : > { %p42_p12 = por %p41_p6, %p40_p2  ;;  %p1100_p7 = por %p1262_p3, %p40_p2 }
  0x34   : > { %s1106_s8 = sand.u32 1, %s963_s23   ;;  %s666_s10 = sshll.u32 %s967_s24, 4 }
  0x35   : > { %s1263_s11 = scalar_select %p1100_p7, 1, 0 }
  0x36   : > { %s241_s12 = scalar_lea.vmem [#allocation2], %s1106_s8  ;;  %s1113_s16 = scalar_lea.hbm %s1245_s0, %s666_s10 }
  0x37   : > { %s248_s13 = sshll.u32 %s241_s12, 4  ;;  %p1117_p11 = pnand %p734_p9, %p42_p12  ;;  %s1115_s13 = int_to_ptr.vmem [resolvable:$true] %s248_s13 }
  0x38   : > { %s682_s19 = sshll.u32 %s967_s24, 7  ;;  %s239_s20 = scalar_lea.sflag [#allocation3], %s1106_s8 }
  0x39   : > { %s839_s30 = scalar_lea.hbm %s1113_s16, 16  ;;  %p841_p0 = pneg %p1117_p11 }
  0x3a   : > { %p840_p13 = scmp.ne.s32.totalorder %s1113_s16, %s839_s30  ;;  %s844_s12 = scalar_lea.hbm %s1245_s0, 32 }
  0x3b   : > { %p845_p1 = scmp.lt.s32.totalorder %s1113_s16, %s1245_s0  ;;  %p846_p2 = scmp.lt.s32.totalorder %s844_s12, %s839_s30 }
  0x3c   : > { %p842_p5 = pnand %p841_p0, %p840_p13 }
  0x3d   : > { %p847_p6 = por %p846_p2, %p845_p1 }
  0x3e   : > { %p843_p10 = pneg %p842_p5 }
  0x40   : > { %p848_p12 = pnand %p847_p6, %p843_p10 }
  0x42   : > { %851 = shalt.err (!%p848_p12)
}
  0x43   : > { %s852_s18 = scalar_lea.vmem %s1115_s13, 16  ;;  %s975_s7 = smov [#allocation2]  }
  0x44   : > { %p853_p3 = scmp.ne.s32.totalorder %s1115_s13, %s852_s18  ;;  %s857_s10 = sshll.u32 %s975_s7, 4  ;;  %s858_s10 = int_to_ptr.vmem [resolvable:$false] %s857_s10 }
  0x45   : > { %s859_s1 = scalar_lea.vmem %s858_s10, 32  ;;  %p860_p5 = scmp.lt.s32.totalorder %s1115_s13, %s858_s10 }
  0x46   : > { %p855_p9 = pnand %p853_p3, %p841_p0  ;;  %p861_p7 = scmp.lt.s32.totalorder %s859_s1, %s852_s18 }
  0x48   : > { %p856_p13 = pneg %p855_p9  ;;  %p862_p4 = por %p861_p7, %p860_p5 }
  0x4a   : > { %p863_p1 = pnand %p862_p4, %p856_p13 }
  0x4c   : > { %866 = shalt.err (!%p863_p1)
}
  0x4d   : > { %724 = dma.hbm_to_vmem [thread:$0]  (!%p1117_p11), %s1113_s16, 16, %s1115_s13, %s239_s20  }
  0x4e   : > { %s1151_s14 = scalar_lea.hbm %s1250_s5, %s682_s19  ;;  %s1265_s15 = sshll.u32 %s1106_s8, 3 }
  0x4f   : > { %s259_s1 = scalar_lea.vmem [#allocation8], %s1265_s15  ;;  %s256_s7 = scalar_lea.sflag [#allocation9], %s1106_s8 }
  0x50   : > { %s267_s18 = sshll.u32 %s259_s1, 4  ;;  %s867_s10 = scalar_lea.hbm %s1151_s14, 128  ;;  %s268_s18 = int_to_ptr.vmem [resolvable:$true] %s267_s18 }
  0x51   : > { %p868_p4 = scmp.ne.s32.totalorder %s1151_s14, %s867_s10  ;;  %s872_s20 = scalar_lea.hbm %s1250_s5, 256 }
  0x52   : > { %p873_p2 = scmp.lt.s32.totalorder %s1151_s14, %s1250_s5  ;;  %p874_p6 = scmp.lt.s32.totalorder %s872_s20, %s867_s10 }
  0x53   : > { %p870_p7 = pnand %p868_p4, %p841_p0 }
  0x54   : > { %p875_p12 = por %p874_p6, %p873_p2 }
  0x55   : > { %p871_p10 = pneg %p870_p7 }
  0x57   : > { %p876_p3 = pnand %p875_p12, %p871_p10 }
  0x59   : > { %879 = shalt.err (!%p876_p3)
}
  0x5a   : > { %s880_s12 = scalar_lea.vmem %s268_s18, 128  ;;  %s976_s8 = smov [#allocation8]  }
  0x5b   : > { %p881_p9 = scmp.ne.s32.totalorder %s268_s18, %s880_s12  ;;  %s885_s15 = sshll.u32 %s976_s8, 4  ;;  %s886_s15 = int_to_ptr.vmem [resolvable:$false] %s885_s15 }
  0x5c   : > { %s887_s1 = scalar_lea.vmem %s886_s15, 256  ;;  %p888_p1 = scmp.lt.s32.totalorder %s268_s18, %s886_s15 }
  0x5d   : > { %p883_p13 = pnand %p881_p9, %p841_p0  ;;  %p889_p4 = scmp.lt.s32.totalorder %s887_s1, %s880_s12 }
  0x5f   : > { %p884_p5 = pneg %p883_p13  ;;  %p890_p7 = por %p889_p4, %p888_p1 }
  0x61   : > { %p891_p8 = pnand %p890_p7, %p884_p5 }
  0x63   : > { %894 = shalt.err (!%p891_p8)
}
  0x64   : > { %727 = dma.hbm_to_vmem [thread:$0]  (!%p1117_p11), %s1151_s14, 128, %s268_s18, %s256_s7  }
  0x65   : > { %p1266_p10 = scmp.ne.s32.totalorder %s1259_s29, 0 }
  0x66   : > { %s1177_s10 = sand.u32 (!%p1266_p10), 1, %s959_s22   ;;  %p1267_p0 = scmp.ne.s32.totalorder (!%p1266_p10), %s1257_s27, 0 }
  0x67   : > { %276 = sbr.rel (%p1266_p10) target bundleno = 571 (0x23b), region = 44  ;;  %s279_s13 = scalar_lea.sflag (!%p1266_p10), [#allocation3], %s1177_s10 }
  0x68   : > { %s281_s16 = scalar_lea.vmem (!%p1266_p10), [#allocation2], %s1177_s10 }
  0x6c   : > { %938 = dma.done.wait (%p1267_p0), %s279_s13, 16  }
  0x6d   : > { %940 = vsyncadd (%p1267_p0), %s279_s13, 4294967280  ;;  %p1268_p8 = scmp.eq.s32.totalorder %s1036_s25, 0 }
  0x6f   : > { %942 = dma.done.wait (%p1268_p8), [#allocation6], 1536   ;;  %p1269_p11 = pmov %p1268_p8 }
  0x70   : > { %s673_s29 = sshll.u32 %s1177_s10, 3  ;;  %s295_s17 = scalar_lea.sflag [#allocation9], %s1177_s10 }
  0x71   : > { %944 = vsyncadd (%p1269_p11), [#allocation6], 4294965760  ;;  %s1193_s14 = scalar_lea.vmem [#allocation8], %s673_s29 }
  0x72   : > { %946 = dma.done.wait (%p1267_p0), %s295_s17, 128  }
  0x73   : > { %948 = vsyncadd (%p1267_p0), %s295_s17, 4294967168  ;;  %v977_v0 = vmov 0.0   ;;  %vm978_vm0 = vmmov 0   ;;  %v335_v1 = vld [vmem:[#allocation5 + $0x18] sm:$0xff]  ;;  %v334_v2 = vld [vmem:[#allocation5 + $0x10] sm:$0xff]  ;;  %vm337_vm1 = vcmask 261120   ;;  %v422_v19 = vlaneseq }
  0x74   : > { %689 = vmatprep.subr.mxu0 %v977_v0  ;;  %697 = vmatprep.mubr.msk.f32.mxu0 %vm978_vm0, %v977_v0  ;;  %v419_v3 = vld [vmem:[#allocation7 + $0x38] sm:$0xff]  ;;  %v333_v4 = vld [vmem:[#allocation5 + $0x8] sm:$0xff]  ;;  %v418_v5 = vld [vmem:[#allocation7 + $0x30] sm:$0xff]  ;;  %s683_s19 = sshll.u32 %s1036_s25, 7  ;;  %s330_s30 = scalar_lea.vmem [#allocation10], %s673_s29 }
  0x75   : > { %499 = vmatprep.mubr.f32.mxu1 %v977_v0  ;;  %690 = vmatpush3.msra.mxu0 %v335_v1  ;;  %v417_v6 = vld [vmem:[#allocation7 + $0x28] sm:$0xff]  ;;  %v332_v7 = vld [vmem:[#allocation5] sm:$0xff]  ;;  %v331_v8 = vld [vmem:[%s281_s16] sm:$0x1]  ;;  %v423_v20 = vshrl.u32 %v422_v19, 7  ;;  %s552_s12 = sshll.u32 %s330_s30, 4  ;;  %s550_s1 = scalar_lea.hbm %s1251_s6, %s683_s19  ;;  %s553_s12 = int_to_ptr.vmem [resolvable:$true] %s552_s12 }
  0x76   : > { %691 = vmatprep.subr.mxu0 %v977_v0  ;;  %459 = vmatprep.subr.mxu1 %v419_v3  ;;  %v416_v9 = vld [vmem:[#allocation7 + $0x20] sm:$0xff]  ;;  %v415_v10 = vld [vmem:[#allocation7 + $0x18] sm:$0xff]  ;;  %v414_v11 = vld [vmem:[#allocation7 + $0x10] sm:$0xff]  ;;  %s538_s13 = scalar_lea.sflag [#allocation4], %s1177_s10  ;;  %s895_s16 = scalar_lea.vmem %s553_s12, 128 }
  0x77   : > { %692 = vmatpush3.msra.mxu0 %v334_v2  ;;  %460 = vmatpush1.msra.mxu1 %v418_v5  ;;  %v413_v12 = vld [vmem:[#allocation7 + $0x8] sm:$0xff]  ;;  %v412_v13 = vld [vmem:[#allocation7] sm:$0xff]  ;;  %v336_v14 = vld [vmem:[%s1247_s2] sm:$0x1]  ;;  %v424_v21 = vsub.s32 0, %v423_v20  ;;  %v428_v23 = vsub.s32 1, %v423_v20  ;;  %p896_p2 = scmp.ne.s32.totalorder %s553_s12, %s895_s16 }
  0x78   : > { %693 = vmatprep.subr.mxu0 %v977_v0  ;;  %461 = vmatprep.subr.mxu1 %v417_v6  ;;  %v420_v22 = vld [vmem:[%s1249_s4] sm:$0x3]  ;;  %v518_v38 = vld [vmem:[%s1193_s14] sm:$0xff]  ;;  %p1270_p6 = scmp.ne.s32.totalorder %s1263_s11, 0  ;;  %s979_s17 = smov [#allocation10]  }
  0x79   : > { %694 = vmatpush3.msra.mxu0 %v333_v4  ;;  %462 = vmatpush1.msra.mxu1 %v416_v9  ;;  %v425_v24 = vrot.slane %v420_v22, %v424_v21  ;;  %v429_v25 = vrot.slane %v420_v22, %v428_v23  ;;  %v528_v41 = vcombine.high %v518_v38, %v518_v38  ;;  %s899_s25 = sshll.u32 %s979_s17, 4  ;;  %s900_s25 = int_to_ptr.vmem [resolvable:$false] %s899_s25 }
  0x7a   : > { %695 = vmatprep.subr.mxu0 %v977_v0  ;;  %463 = vmatprep.subr.mxu1 %v415_v10  ;;  %p897_p12 = pnand %p896_p2, %p1270_p6  ;;  %s901_s29 = scalar_lea.vmem %s900_s25, 256 }
  0x7b   : > { %696 = vmatpush3.msra.mxu0 %v332_v7  ;;  %464 = vmatpush1.msra.mxu1 %v414_v11  ;;  %p902_p9 = scmp.lt.s32.totalorder %s553_s12, %s900_s25  ;;  %p903_p13 = scmp.lt.s32.totalorder %s901_s29, %s895_s16 }
  0x7c   : > { %698 = vmatmul.mubr.msk.f32.vlgmr.msra.gmra.mxu0 %vm337_vm1, %v331_v8  ;;  %465 = vmatprep.subr.mxu1 %v413_v12  ;;  %p898_p3 = pneg %p897_p12 }
  0x7d   : > { %466 = vmatpush1.msra.mxu1 %v412_v13  ;;  %p904_p5 = por %p903_p13, %p902_p9 }
  0x7f   : > { %p905_p1 = pnand %p904_p5, %p898_p3 }
 0x13c   : > { %v407_v15 = vpop.f32.mrf.mxu0 }
 0x13d   : > { %v408_v16 = vadd.f32 %v407_v15, %v336_v14 }
 0x13e   : > { %v699_v17 = vpop.f32.mrf.mxu0 }
 0x13f   : > { %v411_v18 = vmax.f32 %v408_v16, 0.0 }
 0x141   : > { %676 = vmatmul.mubr.msk.f32.vlgmr.msra.gmra.mxu1 %vm337_vm1, %v411_v18 }
 0x201   : > { %v501_v26 = vpop.f32.mrf.mxu1 }
 0x202   : > { %v502_v27 = vadd.f32 %v501_v26, %v425_v24 }
 0x203   : > { %v503_v28 = vpop.f32.mrf.mxu1 }
 0x204   : > { %v506_v29 = vsub.f32 0.0, %v502_v27  ;;  %v504_v30 = vadd.f32 %v503_v28, %v429_v25 }
 0x206   : > { %v508_v31 = vmul.f32 1.442695, %v506_v29  ;;  %v507_v32 = vsub.f32 0.0, %v504_v30 }
 0x208   : > { %779 = vpow2.f32 %v508_v31  ;;  %v510_v33 = vmul.f32 1.442695, %v507_v32 }
 0x20a   : > { %781 = vpow2.f32 %v510_v33 }
 0x215   : > { %v780_v34 = vpop.eup %779 }
 0x216   : > { %v512_v35 = vadd.f32 1.0, %v780_v34 }
 0x217   : > { %v782_v36 = vpop.eup %781 }
 0x218   : > { %783 = vrcp.f32 %v512_v35  ;;  %v513_v37 = vadd.f32 1.0, %v782_v36 }
 0x21a   : > { %785 = vrcp.f32 %v513_v37 }
 0x225   : > { %v784_v39 = vpop.eup %783 }
 0x226   : > { %v522_v40 = vrot.slane %v784_v39, %v424_v21 }
 0x227   : > { %v786_v42 = vpop.eup %785 }
 0x228   : > { %v526_v43 = vrot.slane %v786_v42, %v424_v21  ;;  %v530_v44 = vmul.f32 %v522_v40, %v518_v38 }
 0x22a   : > { %v531_v45 = vmul.f32 %v528_v41, %v526_v43 }
 0x22c   : > { %v534_v46 = vcombine.low %v530_v44, %v531_v45 }
 0x22e   : > { %536 = vst [vmem:[%s330_s30] sm:$0xff] %v534_v46 }
 0x22f   : > { %908 = shalt.err (!%p905_p1)
}
 0x230   : > { %s909_s14 = scalar_lea.hbm %s550_s1, 128  ;;  %s913_s18 = scalar_lea.hbm %s1251_s6, 256 }
 0x231   : > { %p910_p4 = scmp.ne.s32.totalorder %s550_s1, %s909_s14  ;;  %p914_p0 = scmp.lt.s32.totalorder %s550_s1, %s1251_s6 }
 0x232   : > { %p915_p8 = scmp.lt.s32.totalorder %s913_s18, %s909_s14 }
 0x233   : > { %p911_p7 = pnand %p910_p4, %p1270_p6 }
 0x234   : > { %p916_p11 = por %p915_p8, %p914_p0 }
 0x235   : > { %p912_p10 = pneg %p911_p7 }
 0x237   : > { %p917_p2 = pnand %p916_p11, %p912_p10 }
 0x239   : > { %920 = shalt.err (!%p917_p2)
}
 0x23a   : > { %712 = dma.vmem_to_hbm [thread:$0]  (%p1270_p6), %s553_s12, 128, %s550_s1, %s538_s13  }
 0x23b PF: > { %s564_s19 = sand.u32 1, %s955_s21   ;;  %p1271_p12 = scmp.ne.s32.totalorder %s1258_s28, 0 }
 0x23c   : > { %p1272_p3 = scmp.ge.s32.totalorder %s967_s24, 2  ;;  %s565_s30 = scalar_lea.sflag [#allocation4], %s564_s19 }
 0x23e   : > { %p729_p9 = pnand %p1272_p3, %p1271_p12 }
 0x240   : > { %p730_p13 = pneg %p729_p9 }
 0x242   : > { %950 = dma.done.wait (%p730_p13), %s565_s30, 128  }
 0x243   : > { %952 = vsyncadd (%p730_p13), %s565_s30, 4294967168  ;;  %p23_p5 = scmp.ge.s32.totalorder %s1087_s26, 4   ;;  %s1273_s21 = smov %s959_s22 }
 0x244   : > { %s1274_s22 = smov %s963_s23  ;;  %s1275_s23 = smov %s1096_s9 }
 0x245   : > { %s1276_s24 = smov %s1087_s26  ;;  %25 = sbr.rel (!%p23_p5) target bundleno = 10 (0xa), region = 110 }
 0x24a   :  { %570 = vsyncpa [#allocation3], 1 }
 0x24b   :  { %572 = vsyncpa [#allocation3 + $0x1], 1 }
 0x24c   :  { %573 = vsyncpa [#allocation6], 1 }
 0x24d   :  { %574 = vsyncpa [#allocation9], 1 }
 0x24e   :  { %576 = vsyncpa [#allocation9 + $0x1], 1 }
 0x24f   :  { %577 = vsyncpa [#allocation4], 1 }
 0x250   :  { %579 = vsyncpa [#allocation4 + $0x1], 1 }

</bundles_post_ra>
